<compile_context>
chip_gen: v7x
topology: tpu7x:2x2x1
jax: 0.10.0
libtpu: 0.0.40
codegen_flags: <defaults>
</compile_context>

<pallas_src>
import functools

import jax
import jax.numpy as jnp
from jax import lax
from jax.experimental import pallas as pl
from jax.experimental.pallas import tpu as pltpu


def _round_up(n: int, m: int) -> int:
    return ((n + m - 1) // m) * m


def _mlp_kernel(x_ref, w1_ref, b1_ref, w2_ref, b2_ref, w3_ref, b3_ref, o_ref):
    """One batch tile.  x_ref is (tb, input_dim) f32 in its native layout."""
    compute_dtype = w1_ref.dtype

    # In-kernel cast (free — kernel is HBM-bound, VPU slots idle).
    x = x_ref[...].astype(compute_dtype)                         # (tb, D)

    # Layer 1: contract the feature axis of both operands -> (16, tb).
    # Keeps batch on the lane axis without any wrapper-side transpose.
    h1 = lax.dot_general(w1_ref[...], x,
                         dimension_numbers=(((1,), (1,)), ((), ())),
                         preferred_element_type=jnp.float32)     # (16, tb)
    h1 = jnp.maximum(h1 + b1_ref[...], 0.0)                      # f32 relu

    # Layer 2: (8, 16) @ (16, tb) -> (8, tb).
    h2 = jnp.dot(w2_ref[...], h1.astype(compute_dtype),
                 preferred_element_type=jnp.float32)
    h2 = jnp.maximum(h2 + b2_ref[...], 0.0)                      # f32 relu

    # Layer 3: (1, 8) @ (8, tb) -> (1, tb), sigmoid in f32.
    # TODO(synk): could be 8 VPU broadcast-FMAs instead of an MXU push/pop,
    # but the kernel is memory-bound so it makes ~0 wall-clock difference.
    h3 = jnp.dot(w3_ref[...], h2.astype(compute_dtype),
                 preferred_element_type=jnp.float32)
    o_ref[...] = jax.nn.sigmoid(h3 + b3_ref[...]).astype(o_ref.dtype)


def prepare_params(params, compute_dtype=jnp.bfloat16):
    """One-time prep: weights -> compute dtype, biases -> (out, 1) f32.

    Weights keep the PyTorch (out_features, in_features) convention because
    the kernel contracts on the feature axis directly — no transpose needed.
    """
    return {
        "w1": jnp.asarray(params["w1"], compute_dtype),          # (16, D)
        "w2": jnp.asarray(params["w2"], compute_dtype),          # (8, 16)
        "w3": jnp.asarray(params["w3"], compute_dtype),          # (1, 8)
        "b1": jnp.asarray(params["b1"], jnp.float32).reshape(-1, 1),
        "b2": jnp.asarray(params["b2"], jnp.float32).reshape(-1, 1),
        "b3": jnp.asarray(params["b3"], jnp.float32).reshape(-1, 1),
    }


def _choose_tile(B: int, tile_b: int) -> int:
    """Pick a batch tile: big enough to amortize grid-step overhead, lane/
    sublane legal, and (when possible) yielding >= 2 grid steps for megacore."""
    tile_b = max(128, _round_up(tile_b, 128))
    if B <= 256:
        # Single block equal to the full array dims — always layout-legal.
        return B
    if B <= tile_b:
        # Split into (at least) two lane-aligned tiles so both TensorCores
        # get work under dimension_semantics=("parallel",).
        return _round_up(pl.cdiv(B, 2), 128)
    return tile_b


@functools.partial(jax.jit, static_argnames=("tile_b",))
def mlp_forward(x, prep, *, tile_b=8192):
    """x: [B, input_dim] float32.  prep: prepare_params() output.  Returns [B, 1] f32."""
    B, input_dim = x.shape
    w1, w2, w3 = prep["w1"], prep["w2"], prep["w3"]
    b1, b2, b3 = prep["b1"], prep["b2"], prep["b3"]

    x = jnp.asarray(x, jnp.float32)                              # native layout, no transpose
    tb = _choose_tile(B, tile_b)
    grid = (pl.cdiv(B, tb),)                                     # partial last block handled by Pallas

    const = lambda shape: pl.BlockSpec(shape, lambda i: (0, 0))  # VMEM-resident weights

    weight_bytes = sum(int(a.size) * a.dtype.itemsize
                       for a in (w1, w2, w3, b1, b2, b3))
    cost = pl.CostEstimate(
        flops=2 * B * (input_dim * 16 + 16 * 8 + 8 * 1),
        transcendentals=B,                                       # sigmoid exp
        bytes_accessed=B * input_dim * 4 + B * 4 + weight_bytes, # f32 x read + f32 out write
    )

    out = pl.pallas_call(
        _mlp_kernel,
        out_shape=jax.ShapeDtypeStruct((1, B), jnp.float32),
        grid=grid,
        in_specs=[
            pl.BlockSpec((tb, input_dim), lambda i: (i, 0)),     # x: native (B, D), tiled on batch
            const(w1.shape), const(b1.shape),
            const(w2.shape), const(b2.shape),
            const(w3.shape), const(b3.shape),
        ],
        out_specs=pl.BlockSpec((1, tb), lambda i: (0, i)),       # lane-dense output
        compiler_params=pltpu.CompilerParams(
            dimension_semantics=("parallel",),
        ),
        cost_estimate=cost,
    )(x, w1, b1, w2, b2, w3, b3)

    return out[0, :B].reshape(B, 1)


def init_params(key, input_dim):
    """Deterministic synthetic init matching nn.Linear shapes/convention."""
    ks = jax.random.split(key, 6)

    def lin(kw, kb, fan_in, fan_out):
        bound = 1.0 / jnp.sqrt(fan_in)
        w = jax.random.uniform(kw, (fan_out, fan_in), jnp.float32, -bound, bound)
        b = jax.random.uniform(kb, (fan_out,), jnp.float32, -bound, bound)
        return w, b

    w1, b1 = lin(ks[0], ks[1], input_dim, 16)
    w2, b2 = lin(ks[2], ks[3], 16, 8)
    w3, b3 = lin(ks[4], ks[5], 8, 1)
    return {"w1": w1, "b1": b1, "w2": w2, "b2": b2, "w3": w3, "b3": b3}


def reference_forward(x, p):
    h = jnp.maximum(x @ p["w1"].T + p["b1"], 0.0)
    h = jnp.maximum(h @ p["w2"].T + p["b2"], 0.0)
    h = h @ p["w3"].T + p["b3"]
    return jax.nn.sigmoid(h)


if __name__ == "__main__":
    key = jax.random.PRNGKey(0)
    k_x, k_x2, k_p = jax.random.split(key, 3)
    batch, input_dim = 8, 32

    params = init_params(k_p, input_dim)
    prep = prepare_params(params)

    # Small-batch check (single full-array block).
    x = jax.random.normal(k_x, (batch, input_dim), jnp.float32)
    out = jax.block_until_ready(mlp_forward(x, prep))
    ref = reference_forward(x, params)
    assert out.shape == (batch, 1)
    # bf16 matmul operands with f32 accumulation -> loose tolerance vs f32 ref.
    assert jnp.allclose(out, ref, atol=2e-2, rtol=2e-2), float(
        jnp.max(jnp.abs(out - ref)))

    # Multi-tile check: non-multiple batch -> several grid steps + a partial
    # last block handled implicitly by Pallas (no explicit padding).
    x2 = jax.random.normal(k_x2, (513, input_dim), jnp.float32)
    out2 = jax.block_until_ready(mlp_forward(x2, prep, tile_b=128))
    ref2 = reference_forward(x2, params)
    assert out2.shape == (513, 1)
    assert jnp.allclose(out2, ref2, atol=2e-2, rtol=2e-2), float(
        jnp.max(jnp.abs(out2 - ref2)))

    print("KERNEL_OK")
</pallas_src>

<mosaic_0001>
module attributes {stable_mosaic.version = 11 : i64} {
  func.func @_mlp_kernel(%arg0: i32, %arg1: memref<8x32xf32, #tpu.memory_space<vmem>>, %arg2: memref<16x32xbf16, #tpu.memory_space<vmem>>, %arg3: memref<16x1xf32, #tpu.memory_space<vmem>>, %arg4: memref<8x16xbf16, #tpu.memory_space<vmem>>, %arg5: memref<8x1xf32, #tpu.memory_space<vmem>>, %arg6: memref<1x8xbf16, #tpu.memory_space<vmem>>, %arg7: memref<1x1xf32, #tpu.memory_space<vmem>>, %arg8: memref<1x8xf32, #tpu.memory_space<vmem>>) attributes {dimension_semantics = [#tpu.dimension_semantics<parallel>], iteration_bounds = array<i64: 1>, scalar_prefetch = 0 : i64, scratch_operands = 0 : i64, tpu.core_type = #tpu.core_type<tc>, window_params = [{transform_indices = @transform_0, window_bounds = array<i64: 8, 32>}, {pipeline_mode = #tpu.pipeline_mode<synchronous>, transform_indices = @transform_1, window_bounds = array<i64: 16, 32>}, {pipeline_mode = #tpu.pipeline_mode<synchronous>, transform_indices = @transform_2, window_bounds = array<i64: 16, 1>}, {pipeline_mode = #tpu.pipeline_mode<synchronous>, transform_indices = @transform_3, window_bounds = array<i64: 8, 16>}, {pipeline_mode = #tpu.pipeline_mode<synchronous>, transform_indices = @transform_4, window_bounds = array<i64: 8, 1>}, {pipeline_mode = #tpu.pipeline_mode<synchronous>, transform_indices = @transform_5, window_bounds = array<i64: 1, 8>}, {pipeline_mode = #tpu.pipeline_mode<synchronous>, transform_indices = @transform_6, window_bounds = array<i64: 1, 1>}, {transform_indices = @transform_7, window_bounds = array<i64: 1, 8>}]} {
    %c0 = arith.constant 0 : index
    %c0_0 = arith.constant 0 : index
    %0 = vector.load %arg1[%c0, %c0_0] : memref<8x32xf32, #tpu.memory_space<vmem>>, vector<8x32xf32>
    %1 = arith.truncf %0 : vector<8x32xf32> to vector<8x32xbf16>
    %c0_1 = arith.constant 0 : index
    %c0_2 = arith.constant 0 : index
    %2 = vector.load %arg2[%c0_1, %c0_2] : memref<16x32xbf16, #tpu.memory_space<vmem>>, vector<16x32xbf16>
    %cst = arith.constant dense<0.000000e+00> : vector<16x8xf32>
    %3 = tpu.matmul %2, %1, %cst {dimension_numbers = #tpu.dot_dimension_numbers<[1], [1], [0], [0], [0, 0, 1, 0], [], []>} : vector<16x32xbf16>, vector<8x32xbf16>, vector<16x8xf32> -> vector<16x8xf32>
    %c0_3 = arith.constant 0 : index
    %c0_4 = arith.constant 0 : index
    %4 = vector.load %arg3[%c0_3, %c0_4] : memref<16x1xf32, #tpu.memory_space<vmem>>, vector<16x1xf32>
    %5 = vector.broadcast %4 : vector<16x1xf32> to vector<16x8xf32>
    %6 = arith.addf %3, %5 : vector<16x8xf32>
    %cst_5 = arith.constant 0.000000e+00 : f32
    %7 = vector.broadcast %cst_5 : f32 to vector<16x8xf32>
    %8 = arith.maximumf %6, %7 : vector<16x8xf32>
    %c0_6 = arith.constant 0 : index
    %c0_7 = arith.constant 0 : index
    %9 = vector.load %arg4[%c0_6, %c0_7] : memref<8x16xbf16, #tpu.memory_space<vmem>>, vector<8x16xbf16>
    %10 = arith.truncf %8 : vector<16x8xf32> to vector<16x8xbf16>
    %cst_8 = arith.constant dense<0.000000e+00> : vector<8x8xf32>
    %11 = tpu.matmul %9, %10, %cst_8 {dimension_numbers = #tpu.dot_dimension_numbers<[1], [0], [0], [1], [0, 0, 1, 1], [], []>} : vector<8x16xbf16>, vector<16x8xbf16>, vector<8x8xf32> -> vector<8x8xf32>
    %c0_9 = arith.constant 0 : index
    %c0_10 = arith.constant 0 : index
    %12 = vector.load %arg5[%c0_9, %c0_10] : memref<8x1xf32, #tpu.memory_space<vmem>>, vector<8x1xf32>
    %13 = vector.broadcast %12 : vector<8x1xf32> to vector<8x8xf32>
    %14 = arith.addf %11, %13 : vector<8x8xf32>
    %cst_11 = arith.constant 0.000000e+00 : f32
    %15 = vector.broadcast %cst_11 : f32 to vector<8x8xf32>
    %16 = arith.maximumf %14, %15 : vector<8x8xf32>
    %c0_12 = arith.constant 0 : index
    %c0_13 = arith.constant 0 : index
    %17 = vector.load %arg6[%c0_12, %c0_13] : memref<1x8xbf16, #tpu.memory_space<vmem>>, vector<1x8xbf16>
    %18 = arith.truncf %16 : vector<8x8xf32> to vector<8x8xbf16>
    %cst_14 = arith.constant dense<0.000000e+00> : vector<1x8xf32>
    %19 = tpu.matmul %17, %18, %cst_14 {dimension_numbers = #tpu.dot_dimension_numbers<[1], [0], [0], [1], [0, 0, 1, 1], [], []>} : vector<1x8xbf16>, vector<8x8xbf16>, vector<1x8xf32> -> vector<1x8xf32>
    %c0_15 = arith.constant 0 : index
    %c0_16 = arith.constant 0 : index
    %20 = vector.load %arg7[%c0_15, %c0_16] : memref<1x1xf32, #tpu.memory_space<vmem>>, vector<1x1xf32>
    %21 = vector.broadcast %20 : vector<1x1xf32> to vector<1x8xf32>
    %22 = arith.addf %19, %21 : vector<1x8xf32>
    %23 = arith.negf %22 : vector<1x8xf32>
    %24 = math.exp %23 : vector<1x8xf32>
    %cst_17 = arith.constant 1.000000e+00 : f32
    %25 = vector.broadcast %cst_17 : f32 to vector<1x8xf32>
    %26 = arith.addf %25, %24 : vector<1x8xf32>
    %27 = arith.divf %25, %26 : vector<1x8xf32>
    %c0_18 = arith.constant 0 : index
    %c0_19 = arith.constant 0 : index
    %28 = vector.load %arg8[%c0_18, %c0_19] : memref<1x8xf32, #tpu.memory_space<vmem>>, vector<1x8xf32>
    tpu.vector_store %arg8[%c0_18, %c0_19], %27 {strides = array<i32>} : memref<1x8xf32, #tpu.memory_space<vmem>>, vector<1x8xf32>,
    return
  }
  func.func @transform_0(%arg0: i32) -> (i32, i32) {
    %c0_i32 = arith.constant 0 : i32
    %c0_i32_0 = arith.constant 0 : i32
    return %arg0, %c0_i32 : i32, i32
  }
  func.func @transform_1(%arg0: i32) -> (i32, i32) {
    %c0_i32 = arith.constant 0 : i32
    %c0_i32_0 = arith.constant 0 : i32
    %c0_i32_1 = arith.constant 0 : i32
    return %c0_i32, %c0_i32_0 : i32, i32
  }
  func.func @transform_2(%arg0: i32) -> (i32, i32) {
    %c0_i32 = arith.constant 0 : i32
    %c0_i32_0 = arith.constant 0 : i32
    %c0_i32_1 = arith.constant 0 : i32
    return %c0_i32, %c0_i32_0 : i32, i32
  }
  func.func @transform_3(%arg0: i32) -> (i32, i32) {
    %c0_i32 = arith.constant 0 : i32
    %c0_i32_0 = arith.constant 0 : i32
    %c0_i32_1 = arith.constant 0 : i32
    return %c0_i32, %c0_i32_0 : i32, i32
  }
  func.func @transform_4(%arg0: i32) -> (i32, i32) {
    %c0_i32 = arith.constant 0 : i32
    %c0_i32_0 = arith.constant 0 : i32
    %c0_i32_1 = arith.constant 0 : i32
    return %c0_i32, %c0_i32_0 : i32, i32
  }
  func.func @transform_5(%arg0: i32) -> (i32, i32) {
    %c0_i32 = arith.constant 0 : i32
    %c0_i32_0 = arith.constant 0 : i32
    %c0_i32_1 = arith.constant 0 : i32
    return %c0_i32, %c0_i32_0 : i32, i32
  }
  func.func @transform_6(%arg0: i32) -> (i32, i32) {
    %c0_i32 = arith.constant 0 : i32
    %c0_i32_0 = arith.constant 0 : i32
    %c0_i32_1 = arith.constant 0 : i32
    return %c0_i32, %c0_i32_0 : i32, i32
  }
  func.func @transform_7(%arg0: i32) -> (i32, i32) {
    %c0_i32 = arith.constant 0 : i32
    %c0_i32_0 = arith.constant 0 : i32
    return %c0_i32, %arg0 : i32, i32
  }
}

</mosaic_0001>

<bundles_post_ra>
// kernel: mlp_forward.1
= control target key start
LH: loop header
LB: loop body
LE: loop exit
PB: predicated region body
PF: predicated region fallthrough
CT: control target
= control target key end

     0   :  { %s385_s0 = inlined_call_operand.vmem [shape: f32[8,32], index: 0, kind: input, shape index: {}]   ;;  %s386_s1 = inlined_call_operand.vmem [shape: bf16[16,32], index: 1, kind: input, shape index: {}]   ;;  %s387_s2 = inlined_call_operand.vmem [shape: f32[16,1], index: 2, kind: input, shape index: {}]   ;;  %s388_s3 = inlined_call_operand.vmem [shape: bf16[8,16], index: 3, kind: input, shape index: {}]   ;;  %s389_s4 = inlined_call_operand.vmem [shape: f32[8,1], index: 4, kind: input, shape index: {}]   ;;  %s390_s5 = inlined_call_operand.vmem [shape: bf16[1,8], index: 5, kind: input, shape index: {}]   ;;  %s391_s6 = inlined_call_operand.<no memory space> [shape: f32[1,1], index: 6, kind: input, shape index: {}]   ;;  %s392_s7 = inlined_call_operand.hbm [shape: f32[1,8], index: 7, kind: output, shape index: {}]  }
   0x1   :  { %v12_v0 = vstv %s391_s6 }
   0x2   :  { %13 = vst [vmem:[#allocation2] sm:$0x1] %v12_v0 }
   0x3   :  { %v30_v1 = vld [vmem:[%s385_s0] sm:$0xff]  ;;  %vm51_vm0 = vcmask 261120   ;;  %v300_v2 = vmov 0.0   ;;  %vm301_vm1 = vmmov 0   ;;  %v302_v5 = vmov 0  }
   0x4   :  { %247 = vmatprep.subr.bf16.mxu0 %v300_v2  ;;  %v31_v3 = vpack.c.bf16 %v30_v1, %v30_v1  ;;  %249 = vmatprep.mubr.msk.bf16.mxu0 %vm301_vm1, %v300_v2  ;;  %v34_v4 = vld [vmem:[%s387_s2] sm:$0xff] }
   0x5   :  { %269 = vset.pattern.permute.xlu0 %v302_v5  ;;  %253 = vmatprep.subr.bf16.mxu1 %v300_v2 }
   0x6   :  { %14 = vsyncpa [#allocation4], 0  ;;  %v56_v6 = vsel %vm51_vm0, %v31_v3, 0  ;;  %38 = vperm.xlu0 %269, %v34_v4   ;;  %255 = vmatprep.mubr.msk.bf16.mxu1 %vm301_vm1, %v300_v2  ;;  %v35_v7 = vld [vmem:[%s387_s2 + $0x8] sm:$0xff]  ;;  %v271_v8 = vld [vmem:[%s386_s1] sm:$0xff]   ;;  %vm109_vm2 = vcmask 130048   ;;  %v162_v33 = vlaneseq }
   0x7   :  { %248 = vmatpush3.bf16.xpose.msra.mxu0 %v56_v6  ;;  %270 = vset.pattern.permute.xlu1 %v302_v5  ;;  %v103_v9 = vld [vmem:[%s389_s4] sm:$0xff]  ;;  %vm170_vm3 = vcmask 1043456   ;;  %vm166_vm4 = vcmask 64512   ;;  %vm220_vm5 = vcmask 57344  }
   0x8   :  { %106 = vperm.xlu1 %270, %v103_v9   ;;  %v101_v22 = vld [vmem:[%s388_s3] sm:$0xf]  ;;  %v163_v34 = vshrl.u32 %v162_v33, 7  ;;  %s303_s3 = smov [#allocation3]  }
   0x9   :  { %v156_v10 = vld [vmem:[#allocation2] sm:$0x1]  ;;  %s228_s12 = sshll.u32 %s303_s3, 4  ;;  %s229_s12 = int_to_ptr.vmem [resolvable:$true] %s228_s12 }
   0xa   :  { %43 = vperm.xlu0 %269, %v35_v7   ;;  %v154_v32 = vld [vmem:[%s390_s5] sm:$0x1]  ;;  %v164_v35 = vsub.s32 0, %v163_v34  ;;  %s276_s5 = scalar_lea.vmem %s229_s12, 16  ;;  %s280_s13 = scalar_lea.vmem %s229_s12, 32 }
   0xb   :  { %p277_p0 = scmp.ne.s32.totalorder %s229_s12, %s276_s5  ;;  %p281_p1 = scmp.lt.s32.totalorder %s229_s12, %s229_s12 }
   0xc   :  { %159 = vperm.xlu1 %270, %v156_v10   ;;  %p282_p2 = scmp.lt.s32.totalorder %s280_s13, %s276_s5 }
   0xe   :  { %250 = vmatmul.mubr.msk.bf16.vlgmr.msra.gmra.mrb[0].mxu0 %vm51_vm0, %v271_v8  ;;  %p283_p3 = por %p282_p2, %p281_p1 }
  0x10   :  { %p284_p4 = pnand %p283_p3, %p277_p0 }
  0x85   :  { %v39_v11 = vpop.permute.xlu0 %38 }
  0x87   :  { %v107_v23 = vpop.permute.xlu1 %106 }
  0x89   :  { %v44_v15 = vpop.permute.xlu0 %43 }
  0x8b   :  { %v160_v36 = vpop.permute.xlu1 %159 }
  0x8c   :  { %v165_v37 = vrot.slane %v160_v36, %v164_v35 }
  0xe1   :  { %v92_v12 = vpop.f32.mrb[0].mxu0 }
  0xe2   :  { %v93_v13 = vadd.f32 %v92_v12, %v39_v11  ;;  %v251_v14 = vpop.f32.mrb[1].mxu0 }
  0xe3   :  { %v95_v16 = vpop.f32.mrb[2].mxu0 }
  0xe4   :  { %v96_v17 = vadd.f32 %v95_v16, %v44_v15  ;;  %v252_v18 = vpop.f32.mrb[3].mxu0  ;;  %v99_v19 = vmax.f32 %v93_v13, 0.0 }
  0xe6   :  { %v100_v20 = vmax.f32 %v96_v17, 0.0 }
  0xe8   :  { %v102_v21 = vpack.c.bf16 %v100_v20, %v99_v19 }
  0xea   :  { %254 = vmatpush3.bf16.msra.mxu1 %v102_v21 }
  0xeb   :  { %259 = vmatprep.subr.bf16.mxu1 %v300_v2 }
  0xed   :  { %256 = vmatmul.mubr.msk.bf16.vlgmr.msra.gmra.mrb[0].mxu1 %vm109_vm2, %v101_v22 }
  0xee   :  { %261 = vmatprep.mubr.msk.bf16.mxu1 %vm301_vm1, %v300_v2 }
 0x1c0   :  { %v147_v24 = vpop.f32.mrb[0].mxu1 }
 0x1c1   :  { %v148_v25 = vadd.f32 %v147_v24, %v107_v23  ;;  %v257_v26 = vpop.f32.mrb[1].mxu1 }
 0x1c2   :  { %v150_v27 = vpop.f32.mrb[2].mxu1 }
 0x1c3   :  { %v153_v28 = vmax.f32 %v148_v25, 0.0  ;;  %v258_v29 = vpop.f32.mrb[3].mxu1 }
 0x1c5   :  { %v155_v30 = vpack.c.bf16 %v153_v28, %v153_v28 }
 0x1c7   :  { %v172_v31 = vsel %vm170_vm3, %v155_v30, 0 }
 0x1c8   :  { %260 = vmatpush3.bf16.msra.mxu1 %v172_v31 }
 0x1cb   :  { %262 = vmatmul.mubr.msk.bf16.vlgmr.msra.gmra.mrb[4].mxu1 %vm166_vm4, %v154_v32 }
 0x29e   :  { %v208_v38 = vpop.f32.mrb[4].mxu1 }
 0x29f   :  { %v209_v39 = vadd.f32 %v208_v38, %v165_v37  ;;  %v263_v40 = vpop.f32.mrb[5].mxu1 }
 0x2a0   :  { %v211_v41 = vpop.f32.mrb[6].mxu1 }
 0x2a1   :  { %v240_v42 = vmul.f32 -1.442695, %v209_v39  ;;  %v264_v43 = vpop.f32.mrb[7].mxu1 }
 0x2a3   :  { %272 = vpow2.f32 %v240_v42 }
 0x2ad   :  { %v273_v44 = vpop.eup %272 }
 0x2ae   :  { %v217_v45 = vadd.f32 1.0, %v273_v44 }
 0x2b0   :  { %274 = vrcp.f32 %v217_v45 }
 0x2ba   :  { %v275_v46 = vpop.eup %274 }
 0x2bb   :  { %221 = vst.msk [vmem:[#allocation3] sm:$0x1] %vm220_vm5, %v275_v46 }
 0x2bc   :  { %287 = shalt.err (!%p284_p4)
}
 0x2bd   :  { %s288_s16 = scalar_lea.hbm %s392_s7, 16 }
 0x2be   :  { %p289_p5 = scmp.ne.s32.totalorder %s392_s7, %s288_s16  ;;  %p292_p6 = scmp.lt.u32.totalorder %s288_s16, %s392_s7 }
 0x2c0   :  { %p294_p7 = pnand %p292_p6, %p289_p5 }
 0x2c2   :  { %297 = shalt.err (!%p294_p7)
}
 0x2c3   :  { %231 = dma.vmem_to_hbm [thread:$0]  %s229_s12, 16, %s392_s7, [#allocation4]  }
 0x2c4   :  { %298 = dma.done.wait [#allocation4], 16  }
 0x2c5   :  { %299 = vsyncadd [#allocation4], 4294967280 }
 0x2c6   :  { %235 = vsyncpa [#allocation4], 1 }

</bundles_post_ra>
